<compile_context>
chip_gen: v6e
topology: v6e:2x2x1
jax: 0.10.0
libtpu: 0.0.40
codegen_flags: <defaults>
</compile_context>

<pallas_src>
import functools

import jax
import jax.numpy as jnp
import numpy as np
from jax.experimental import pallas as pl
from jax.experimental.pallas import tpu as pltpu


def _focal_ce_kernel(x_ref, t_ref, o_ref, *, hw, tp):
    """Accumulates per-position cross-entropy into a lane-wide per-batch partial sum.

    x_ref: (C, tp) logits tile        (batch dim squeezed by the BlockSpec)
    t_ref: (1, tp) int32 targets tile
    o_ref: (1, tp) f32 per-batch partial-CE accumulator (resident across j)
    """
    j = pl.program_id(1)

    @pl.when(j == 0)
    def _init():
        o_ref[...] = jnp.zeros_like(o_ref)

    x = x_ref[...].astype(jnp.float32)          # (C, tp) logits
    t = t_ref[...]                              # (1, tp) int32 targets

    # Row-stable log-sum-exp over the class axis (sublanes).
    m = jnp.max(x, axis=0, keepdims=True)                              # (1, tp)
    lse = m + jnp.log(jnp.sum(jnp.exp(x - m), axis=0, keepdims=True))  # (1, tp)

    # Gather the logit of the target class via one-hot select over classes.
    cls = jax.lax.broadcasted_iota(jnp.int32, x.shape, 0)              # (C, tp)
    picked = jnp.sum(jnp.where(cls == t, x, 0.0), axis=0, keepdims=True)

    # Mask out padded positions (positions >= true H*W contribute nothing).
    pos = j * tp + jax.lax.broadcasted_iota(jnp.int32, (1, tp), 1)
    valid = pos < hw

    # Lane-wide accumulation: one vector add per step, no per-step cross-lane reduce.
    o_ref[...] += jnp.where(valid, lse - picked, 0.0)


def focal_loss_2d(logits_nchw, target_nhw, *, gamma=0.0, size_average=True, tp=4096):
    """Pallas implementation of FocalLoss2d.forward (weight unused, as in the module)."""
    n, c, h, w = logits_nchw.shape
    hw = h * w
    p = n * hw

    itemsize = jnp.dtype(logits_nchw.dtype).itemsize

    # Tile-size budgeting: keep the double-buffered logits tiles within ~12 MiB,
    # which fits the scoped-VMEM defaults of v5e (16 MiB) / v6e (32) / v7x (32).
    vmem_budget = 12 * 1024 * 1024
    tp_cap = max(128, ((vmem_budget // (2 * c * itemsize)) // 128) * 128)
    tp = min(int(tp), tp_cap)
    tp = min(tp, pl.cdiv(hw, 128) * 128)        # never bigger than (padded) H*W
    tp = max(128, (tp // 128) * 128)            # lane-aligned

    hw_pad = pl.cdiv(hw, tp) * tp
    num_tiles = hw_pad // tp

    # Glue: NCHW -> (N, C, H*W) is a free, contiguous reshape (no transpose pass).
    x = logits_nchw.reshape(n, c, hw)
    t = target_nhw.reshape(n, 1, hw).astype(jnp.int32)
    if hw_pad != hw:
        x = jnp.pad(x, ((0, 0), (0, 0), (0, hw_pad - hw)))
        t = jnp.pad(t, ((0, 0), (0, 0), (0, hw_pad - hw)))

    kernel = functools.partial(_focal_ce_kernel, hw=hw, tp=tp)

    cost = pl.CostEstimate(
        flops=5 * c * p,
        transcendentals=(c + 1) * p,
        bytes_accessed=itemsize * c * p + 4 * p,
    )

    partial = pl.pallas_call(
        kernel,
        out_shape=jax.ShapeDtypeStruct((n, 1, tp), jnp.float32),
        grid_spec=pltpu.PrefetchScalarGridSpec(
            num_scalar_prefetch=0,
            grid=(n, num_tiles),
            in_specs=[
                pl.BlockSpec((None, c, tp), lambda b, j: (b, 0, j)),
                pl.BlockSpec((None, 1, tp), lambda b, j: (b, 0, j)),
            ],
            out_specs=pl.BlockSpec((None, 1, tp), lambda b, j: (b, 0, 0)),
        ),
        compiler_params=pltpu.CompilerParams(
            dimension_semantics=("parallel", "arbitrary"),
        ),
        cost_estimate=cost,
    )(x, t)

    # Scalar epilogue in the wrapper: mean CE then the (nonlinear) focal transform.
    ce = jnp.sum(partial) * (1.0 / p)
    logpt = -ce
    pt = jnp.exp(logpt)
    loss = -((1.0 - pt) ** jnp.float32(gamma)) * logpt

    # size_average just mean()s / sum()s a scalar -> identical result either way.
    del size_average
    return loss


def _reference(logits_nchw, target_nhw, gamma):
    # Pure-JAX reference of the PyTorch forward.
    n, c, h, w = logits_nchw.shape
    x = jnp.transpose(logits_nchw, (0, 2, 3, 1)).reshape(-1, c)
    t = target_nhw.reshape(-1)
    logp = jax.nn.log_softmax(x, axis=-1)
    ce = -jnp.mean(jnp.take_along_axis(logp, t[:, None], axis=-1))
    logpt = -ce
    pt = jnp.exp(logpt)
    return -((1.0 - pt) ** gamma) * logpt


if __name__ == "__main__":
    key = jax.random.PRNGKey(0)
    k1, k2 = jax.random.split(key)

    N, C, H, W = 2, 4, 16, 16
    gamma = 2.0  # module default is 0; use 2 to exercise the focal term

    logits = jax.random.normal(k1, (N, C, H, W), dtype=jnp.float32)
    target = jax.random.randint(k2, (N, H, W), 0, C, dtype=jnp.int32)

    loss = focal_loss_2d(logits, target, gamma=gamma, size_average=True)
    loss = jax.block_until_ready(loss)

    ref = _reference(logits, target, gamma)
    assert np.allclose(np.asarray(loss), np.asarray(ref), rtol=1e-5, atol=1e-5), (loss, ref)

    print("KERNEL_OK")
</pallas_src>

<mosaic_0001>
module attributes {stable_mosaic.version = 11 : i64} {
  func.func @_focal_ce_kernel(%arg0: i32, %arg1: i32, %arg2: memref<1x4x256xf32, #tpu.memory_space<vmem>>, %arg3: memref<1x1x256xi32, #tpu.memory_space<vmem>>, %arg4: memref<1x1x256xf32, #tpu.memory_space<vmem>>) attributes {dimension_semantics = [#tpu.dimension_semantics<parallel>, #tpu.dimension_semantics<arbitrary>], iteration_bounds = array<i64: 2, 1>, scalar_prefetch = 0 : i64, scratch_operands = 0 : i64, tpu.core_type = #tpu.core_type<tc>, window_params = [{transform_indices = @transform_0, window_bounds = array<i64: 1, 4, 256>}, {transform_indices = @transform_1, window_bounds = array<i64: 1, 1, 256>}, {transform_indices = @transform_2, window_bounds = array<i64: 1, 1, 256>}]} {
    %c0_i32 = arith.constant 0 : i32
    %0 = arith.cmpi eq, %arg1, %c0_i32 : i32
    %1 = arith.extui %0 : i1 to i32
    %c0_i32_0 = arith.constant 0 : i32
    %2 = arith.cmpi ne, %1, %c0_i32_0 : i32
    scf.if %2 {
      %cst_17 = arith.constant 0.000000e+00 : f32
      %38 = vector.broadcast %cst_17 : f32 to vector<1x256xf32>
      %c0_18 = arith.constant 0 : index
      %c0_19 = arith.constant 0 : index
      %c0_20 = arith.constant 0 : index
      %39 = vector.load %arg4[%c0_18, %c0_19, %c0_20] : memref<1x1x256xf32, #tpu.memory_space<vmem>>, vector<1x1x256xf32>
      %40 = vector.shape_cast %39 : vector<1x1x256xf32> to vector<1x256xf32>
      %41 = vector.shape_cast %38 : vector<1x256xf32> to vector<1x1x256xf32>
      tpu.vector_store %arg4[%c0_18, %c0_19, %c0_20], %41 {strides = array<i32>} : memref<1x1x256xf32, #tpu.memory_space<vmem>>, vector<1x1x256xf32>,
    } else {
    }
    %c0 = arith.constant 0 : index
    %c0_1 = arith.constant 0 : index
    %c0_2 = arith.constant 0 : index
    %3 = vector.load %arg2[%c0, %c0_1, %c0_2] : memref<1x4x256xf32, #tpu.memory_space<vmem>>, vector<1x4x256xf32>
    %4 = vector.shape_cast %3 : vector<1x4x256xf32> to vector<4x256xf32>
    %c0_3 = arith.constant 0 : index
    %c0_4 = arith.constant 0 : index
    %c0_5 = arith.constant 0 : index
    %5 = vector.load %arg3[%c0_3, %c0_4, %c0_5] : memref<1x1x256xi32, #tpu.memory_space<vmem>>, vector<1x1x256xi32>
    %6 = vector.shape_cast %5 : vector<1x1x256xi32> to vector<1x256xi32>
    %cst = arith.constant dense<0xFF800000> : vector<256xf32>
    %7 = vector.multi_reduction <maximumf>, %4, %cst [0] : vector<4x256xf32> to vector<256xf32>
    %8 = vector.shape_cast %7 : vector<256xf32> to vector<1x256xf32>
    %9 = vector.broadcast %8 : vector<1x256xf32> to vector<4x256xf32>
    %10 = arith.subf %4, %9 : vector<4x256xf32>
    %11 = math.exp %10 : vector<4x256xf32>
    %cst_6 = arith.constant dense<0.000000e+00> : vector<256xf32>
    %12 = vector.multi_reduction <add>, %11, %cst_6 [0] : vector<4x256xf32> to vector<256xf32>
    %13 = vector.shape_cast %12 : vector<256xf32> to vector<1x256xf32>
    %14 = math.log %13 : vector<1x256xf32>
    %15 = arith.addf %8, %14 : vector<1x256xf32>
    %16 = tpu.iota {dimensions = array<i32: 0>} : vector<4x256xi32>
    %17 = vector.broadcast %6 : vector<1x256xi32> to vector<4x256xi32>
    %18 = arith.cmpi eq, %16, %17 : vector<4x256xi32>
    %cst_7 = arith.constant 0.000000e+00 : f32
    %19 = vector.broadcast %cst_7 : f32 to vector<4x256xf32>
    %20 = arith.select %18, %4, %19 : vector<4x256xi1>, vector<4x256xf32>
    %cst_8 = arith.constant dense<0.000000e+00> : vector<256xf32>
    %21 = vector.multi_reduction <add>, %20, %cst_8 [0] : vector<4x256xf32> to vector<256xf32>
    %22 = vector.shape_cast %21 : vector<256xf32> to vector<1x256xf32>
    %c256_i32 = arith.constant 256 : i32
    %23 = arith.muli %arg1, %c256_i32 : i32
    %24 = tpu.iota {dimensions = array<i32: 1>} : vector<1x256xi32>
    %25 = vector.broadcast %23 : i32 to vector<1x256xi32>
    %26 = arith.addi %25, %24 : vector<1x256xi32>
    %c256_i32_9 = arith.constant 256 : i32
    %27 = vector.broadcast %c256_i32_9 : i32 to vector<1x256xi32>
    %28 = arith.cmpi slt, %26, %27 : vector<1x256xi32>
    %c0_10 = arith.constant 0 : index
    %c0_11 = arith.constant 0 : index
    %c0_12 = arith.constant 0 : index
    %29 = vector.load %arg4[%c0_10, %c0_11, %c0_12] : memref<1x1x256xf32, #tpu.memory_space<vmem>>, vector<1x1x256xf32>
    %30 = vector.shape_cast %29 : vector<1x1x256xf32> to vector<1x256xf32>
    %31 = arith.subf %15, %22 : vector<1x256xf32>
    %cst_13 = arith.constant 0.000000e+00 : f32
    %32 = vector.broadcast %cst_13 : f32 to vector<1x256xf32>
    %33 = arith.select %28, %31, %32 : vector<1x256xi1>, vector<1x256xf32>
    %34 = arith.addf %30, %33 : vector<1x256xf32>
    %c0_14 = arith.constant 0 : index
    %c0_15 = arith.constant 0 : index
    %c0_16 = arith.constant 0 : index
    %35 = vector.load %arg4[%c0_14, %c0_15, %c0_16] : memref<1x1x256xf32, #tpu.memory_space<vmem>>, vector<1x1x256xf32>
    %36 = vector.shape_cast %35 : vector<1x1x256xf32> to vector<1x256xf32>
    %37 = vector.shape_cast %34 : vector<1x256xf32> to vector<1x1x256xf32>
    tpu.vector_store %arg4[%c0_14, %c0_15, %c0_16], %37 {strides = array<i32>} : memref<1x1x256xf32, #tpu.memory_space<vmem>>, vector<1x1x256xf32>,
    return
  }
  func.func @transform_0(%arg0: i32, %arg1: i32) -> (i32, i32, i32) {
    %c0_i32 = arith.constant 0 : i32
    %c0_i32_0 = arith.constant 0 : i32
    return %arg0, %c0_i32, %arg1 : i32, i32, i32
  }
  func.func @transform_1(%arg0: i32, %arg1: i32) -> (i32, i32, i32) {
    %c0_i32 = arith.constant 0 : i32
    %c0_i32_0 = arith.constant 0 : i32
    return %arg0, %c0_i32, %arg1 : i32, i32, i32
  }
  func.func @transform_2(%arg0: i32, %arg1: i32) -> (i32, i32, i32) {
    %c0_i32 = arith.constant 0 : i32
    %c0_i32_0 = arith.constant 0 : i32
    %c0_i32_1 = arith.constant 0 : i32
    return %arg0, %c0_i32, %c0_i32_0 : i32, i32, i32
  }
}

</mosaic_0001>

<bundles_post_ra>
// kernel: tpu_custom_call.1
= control target key start
LH: loop header
LB: loop body
LE: loop exit
PB: predicated region body
PF: predicated region fallthrough
CT: control target
= control target key end

     0   :  { %7 = vsyncpa [#allocation3], 0  ;;  %s914_s0 = inlined_call_operand.hbm [shape: f32[2,4,256], index: 0, kind: input, shape index: {}]   ;;  %s915_s1 = inlined_call_operand.hbm [shape: s32[2,1,256], index: 1, kind: input, shape index: {}]   ;;  %s916_s2 = inlined_call_operand.hbm [shape: f32[2,1,256], index: 2, kind: output, shape index: {}]  }
   0x1   :  { %9 = vsyncpa [#allocation3 + $0x1], 0 }
   0x2   :  { %10 = vsyncpa [#allocation6], 0 }
   0x3   :  { %12 = vsyncpa [#allocation6 + $0x1], 0 }
   0x4   :  { %13 = vsyncpa [#allocation4], 0 }
   0x5   :  { %15 = vsyncpa [#allocation4 + $0x1], 0  ;;  %s727_s9 = smov 0   ;;  %s729_s10 = smov 0  }
   0x6   :  { %s731_s11 = smov 0   ;;  %s733_s12 = smov 0  }
   0x7   :  { %s735_s13 = smov 0   ;;  %s737_s14 = smov 0  }
   0x8 LB: > { %s467_s15 = sadd.s32 4294967295, %s705_s14   ;;  %s468_s16 = sadd.s32 4294967294, %s705_s14   ;;  %s705_s14 = sphi %s737_s14, %s21_s14   ;;  %s701_s13 = sphi %s735_s13, %s930_s13   ;;  %s697_s12 = sphi %s733_s12, %s929_s12   ;;  %s693_s11 = sphi %s731_s11, %s928_s11   ;;  %s689_s10 = sphi %s729_s10, %s927_s10   ;;  %s685_s9 = sphi %s727_s9, %s926_s9  }
   0x9   : > { %s33_s17 = sadd.s32 1, %s701_s13  ;;  %s42_s18 = sadd.s32 1, %s693_s11 }
   0xa   : > { %p35_p0 = scmp.ge.s32.totalorder %s33_s17, 2  ;;  %p49_p1 = scmp.ne.s32.totalorder %s693_s11, %s689_s10 }
   0xb   : > { %p50_p2 = scmp.eq.s32.totalorder %s705_s14, 0  ;;  %p55_p3 = scmp.ne.s32.totalorder %s689_s10, %s685_s9 }
   0xc   : > { %s932_s17 = smov (%p35_p0, %s33_s17), 0  ;;  %p56_p5 = scmp.eq.s32.totalorder %s467_s15, 0 }
   0xd   : > { %p768_p4 = por %p50_p2, %p49_p1  ;;  %s37_s20 = ssub.s32 %s701_s13, %s932_s17 }
   0xe   : > { %p107_p6 = scmp.eq.s32.totalorder %s467_s15, 1  ;;  %p40_p7 = scmp.eq.s32.totalorder %s37_s20, 0 }
   0xf   : > { %p774_p8 = por %p56_p5, %p55_p3  ;;  %p113_p10 = scmp.eq.s32.totalorder %s468_s16, 1 }
  0x10   : > { %p778_p9 = por %p107_p6, %p49_p1  ;;  %p506_p13 = scmp.lt.s32.totalorder %s705_s14, 2 }
  0x11   : > { %s783_s23 = scalar_select %p40_p7, %s693_s11, %s42_s18  }
  0x12   : > { %p785_p11 = por %p113_p10, %p55_p3  ;;  %s792_s25 = sand.u32 1, %s693_s11  }
  0x13   : > { %s471_s26 = sshll.u32 %s792_s25, 3  ;;  %s486_s27 = sshll.u32 %s701_s13, 7 }
  0x14   : > { %s145_s30 = scalar_lea.hbm %s914_s0, %s486_s27  ;;  %s137_s3 = scalar_lea.vmem [#allocation2], %s471_s26 }
  0x15   : > { %s147_s4 = sshll.u32 %s137_s3, 4  ;;  %p801_p0 = pnand %p506_p13, %p768_p4  ;;  %s148_s4 = int_to_ptr.vmem [resolvable:$true] %s147_s4 }
  0x16   : > { %p477_p1 = scmp.ge.s32.totalorder %s705_s14, 1  ;;  %p173_p2 = scmp.lt.s32.totalorder %s705_s14, 3 }
  0x17   : > { %s134_s6 = scalar_lea.sflag [#allocation3], %s792_s25  ;;  %p567_p3 = pneg %p801_p0 }
  0x18   : > { %s578_s7 = scalar_lea.vmem %s148_s4, 128  ;;  %s707_s8 = smov [#allocation2]  }
  0x19   : > { %p579_p5 = scmp.ne.s32.totalorder %s148_s4, %s578_s7  ;;  %s583_s15 = sshll.u32 %s707_s8, 4  ;;  %s584_s15 = int_to_ptr.vmem [resolvable:$false] %s583_s15 }
  0x1a   : > { %s585_s16 = scalar_lea.vmem %s584_s15, 256  ;;  %p586_p4 = scmp.lt.s32.totalorder %s148_s4, %s584_s15 }
  0x1b   : > { %p581_p6 = pnand %p579_p5, %p567_p3  ;;  %p587_p10 = scmp.lt.s32.totalorder %s585_s16, %s578_s7 }
  0x1d   : > { %p582_p7 = pneg %p581_p6  ;;  %p588_p13 = por %p587_p10, %p586_p4 }
  0x1f   : > { %p589_p12 = pnand %p588_p13, %p582_p7 }
  0x21   : > { %592 = shalt.err (!%p589_p12)
}
  0x22   : > { %498 = dma.hbm_to_vmem [thread:$0]  (!%p801_p0), %s145_s30, 128, %s148_s4, %s134_s6  }
  0x23   : > { %p819_p5 = pnand %p477_p1, %p173_p2  ;;  %s474_s19 = sshll.u32 %s792_s25, 1 }
  0x24   : > { %s487_s20 = sshll.u32 %s701_s13, 5  ;;  %s158_s29 = scalar_lea.vmem [#allocation5], %s474_s19 }
  0x25   : > { %s166_s28 = scalar_lea.hbm %s915_s1, %s487_s20  ;;  %s168_s3 = sshll.u32 %s158_s29, 4  ;;  %s169_s3 = int_to_ptr.vmem [resolvable:$true] %s168_s3 }
  0x26   : > { %s155_s7 = scalar_lea.sflag [#allocation6], %s792_s25  ;;  %s606_s8 = scalar_lea.vmem %s169_s3, 32 }
  0x27   : > { %p607_p12 = scmp.ne.s32.totalorder %s169_s3, %s606_s8  ;;  %s708_s30 = smov [#allocation5]  }
  0x28   : > { %s611_s4 = sshll.u32 %s708_s30, 4  ;;  %s612_s4 = int_to_ptr.vmem [resolvable:$false] %s611_s4 }
  0x29   : > { %p609_p6 = pnand %p607_p12, %p567_p3  ;;  %s613_s6 = scalar_lea.vmem %s612_s4, 64 }
  0x2a   : > { %p614_p1 = scmp.lt.s32.totalorder %s169_s3, %s612_s4  ;;  %p615_p2 = scmp.lt.s32.totalorder %s613_s6, %s606_s8 }
  0x2b   : > { %p610_p7 = pneg %p609_p6 }
  0x2c   : > { %p616_p4 = por %p615_p2, %p614_p1 }
  0x2e   : > { %p617_p10 = pnand %p616_p4, %p610_p7 }
  0x30   : > { %620 = shalt.err (!%p617_p10)
}
  0x31   : > { %501 = dma.hbm_to_vmem [thread:$0]  (!%p801_p0), %s166_s28, 32, %s169_s3, %s155_s7  }
  0x32   : > { %177 = sbr.rel (%p819_p5) target bundleno = 151 (0x97), region = 28  ;;  %s837_s25 = sand.u32 (!%p819_p5), 1, %s689_s10  }
  0x33   : > { %s478_s15 = sshll.u32 (!%p819_p5), %s837_s25, 3  ;;  %s180_s16 = scalar_lea.sflag (!%p819_p5), [#allocation3], %s837_s25 }
  0x34   : > { %s183_s19 = scalar_lea.vmem (!%p819_p5), [#allocation2], %s478_s15 }
  0x37   : > { %672 = dma.done.wait (%p774_p8), %s180_s16, 128  }
  0x38   : > { %674 = vsyncadd (%p774_p8), %s180_s16, 4294967168  ;;  %s479_s5 = sshll.u32 %s837_s25, 1  ;;  %s189_s18 = scalar_lea.sflag [#allocation6], %s837_s25 }
  0x39   : > { %s847_s20 = scalar_lea.vmem [#allocation5], %s479_s5 }
  0x3a   : > { %676 = dma.done.wait (%p774_p8), %s189_s18, 32  }
  0x3b   : > { %678 = vsyncadd (%p774_p8), %s189_s18, 4294967264  ;;  %v224_v0 = vlaneseq  ;;  %s857_s26 = scalar_lea.vmem [#allocation7], %s479_s5  ;;  %v709_v2 = vmov 0.0   ;;  %vm234_vm1 = vcmask 1043456   ;;  %v229_v3 = vld [vmem:[%s183_s19] sm:$0xff]  ;;  %s488_s21 = sshll.u32 %s697_s12, 5 }
  0x3c   : > { %v232_v4 = vcombine.high %v229_v3, %v229_v3  ;;  %v235_v5 = vsel %vm234_vm1, %v229_v3, -inf  ;;  %v230_v24 = vld [vmem:[%s847_s20] sm:$0x3]  ;;  %v710_v58 = vmov 1966171168   ;;  %s360_s27 = sshll.u32 %s857_s26, 4  ;;  %s358_s3 = scalar_lea.hbm %s916_s2, %s488_s21  ;;  %s361_s27 = int_to_ptr.vmem [resolvable:$true] %s360_s27 }
  0x3d   : > { %vm853_vm0 = vcmp.lt.s32.totalorder %v224_v0, 256  ;;  %v236_v6 = vrot.slane %v235_v5, 4  ;;  %v280_v22 = vshrl.u32 %v224_v0, 7  ;;  %v325_v59 = vunpack.c.l.s4 %v710_v58  ;;  %s346_s7 = scalar_lea.sflag [#allocation4], %s837_s25  ;;  %s621_s8 = scalar_lea.vmem %s361_s27, 32 }
  0x3e   : > { %228 = vst.msk [vmem:[%s857_s26] sm:$0x3] %vm853_vm0, %v709_v2  ;;  %v242_v7 = vsel %vm234_vm1, %v232_v4, -inf  ;;  %p622_p8 = scmp.ne.s32.totalorder %s361_s27, %s621_s8  ;;  %s711_s30 = smov [#allocation7]  }
  0x3f   : > { %v237_v8 = vmax.f32 %v235_v5, %v236_v6  ;;  %v243_v9 = vrot.slane %v242_v7, 4  ;;  %v283_v23 = vsub.s32 0, %v280_v22  ;;  %v287_v25 = vsub.s32 1, %v280_v22  ;;  %s625_s4 = sshll.u32 %s711_s30, 4  ;;  %s626_s4 = int_to_ptr.vmem [resolvable:$false] %s625_s4 }
  0x40   : > { %p623_p0 = pnand %p622_p8, %p778_p9  ;;  %s627_s12 = scalar_lea.vmem %s626_s4, 64 }
  0x41   : > { %v238_v10 = vrot.slane %v237_v8, 2  ;;  %v244_v11 = vmax.f32 %v242_v7, %v243_v9  ;;  %v284_v26 = vrot.slane %v230_v24, %v283_v23  ;;  %v288_v27 = vrot.slane %v230_v24, %v287_v25  ;;  %p628_p13 = scmp.lt.s32.totalorder %s361_s27, %s626_s4  ;;  %p629_p5 = scmp.lt.s32.totalorder %s627_s12, %s621_s8 }
  0x42   : > { %p624_p3 = pneg %p623_p0 }
  0x43   : > { %v239_v12 = vmax.f32 %v237_v8, %v238_v10  ;;  %v245_v13 = vrot.slane %v244_v11, 2  ;;  %vm289_vm2 = vcmp.eq.s32.totalorder %v280_v22, %v284_v26  ;;  %vm290_vm3 = vcmp.eq.s32.totalorder %v280_v22, %v288_v27  ;;  %p630_p12 = por %p629_p5, %p628_p13 }
  0x44   : > { %v291_v32 = vsel %vm289_vm2, %v229_v3, 0.0  ;;  %v292_v36 = vsel %vm290_vm3, %v232_v4, 0.0  ;;  %v326_v4 = vunpack.c.0.s8 %v325_v59 }
  0x45   : > { %v240_v14 = vrot.slane %v239_v12, 1  ;;  %v246_v15 = vmax.f32 %v244_v11, %v245_v13  ;;  %v293_v37 = vsel %vm234_vm1, %v291_v32, 0.0  ;;  %v300_v40 = vsel %vm234_vm1, %v292_v36, 0.0  ;;  %v316_v11 = vld [vmem:[%s857_s26] sm:$0x3]  ;;  %p631_p6 = pnand %p630_p12, %p624_p3 }
  0x46   : > { %v294_v43 = vrot.slane %v293_v37, 4  ;;  %v301_v46 = vrot.slane %v300_v40, 4  ;;  %v329_v8 = vsub.s32 %v326_v4, %v280_v22 }
  0x47   : > { %v241_v16 = vmax.f32 %v239_v12, %v240_v14  ;;  %v247_v17 = vrot.slane %v246_v15, 1 }
  0x48   : > { %v295_v49 = vadd.f32 %v294_v43, %v293_v37  ;;  %v302_v51 = vadd.f32 %v301_v46, %v300_v40 }
  0x49   : > { %v248_v18 = vmax.f32 %v246_v15, %v247_v17 }
  0x4a   : > { %v296_v52 = vrot.slane %v295_v49, 2  ;;  %v303_v53 = vrot.slane %v302_v51, 2 }
  0x4b   : > { %v251_v19 = vcombine.low %v241_v16, %v248_v18 }
  0x4c   : > { %v297_v54 = vadd.f32 %v296_v52, %v295_v49  ;;  %v304_v55 = vadd.f32 %v303_v53, %v302_v51 }
  0x4d   : > { %v253_v20 = vsub.f32 %v229_v3, %v251_v19 }
  0x4e   : > { %v298_v56 = vrot.slane %v297_v54, 1  ;;  %v305_v57 = vrot.slane %v304_v55, 1 }
  0x4f   : > { %v254_v21 = vmul.f32 1.442695, %v253_v20 }
  0x50   : > { %v299_v62 = vadd.f32 %v298_v56, %v297_v54  ;;  %v306_v3 = vadd.f32 %v305_v57, %v304_v55 }
  0x51   : > { %559 = vpow2.f32 %v254_v21 }
  0x5e   : > { %v560_v28 = vpop.eup %559 }
  0x5f   : > { %v257_v29 = vcombine.high %v560_v28, %v560_v28  ;;  %v259_v30 = vsel %vm234_vm1, %v560_v28, 0.0 }
  0x60   : > { %v260_v31 = vrot.slane %v259_v30, 4 }
  0x61   : > { %v266_v33 = vsel %vm234_vm1, %v257_v29, 0.0 }
  0x62   : > { %v261_v34 = vadd.f32 %v260_v31, %v259_v30  ;;  %v267_v35 = vrot.slane %v266_v33, 4 }
  0x64   : > { %v262_v38 = vrot.slane %v261_v34, 2  ;;  %v268_v39 = vadd.f32 %v267_v35, %v266_v33 }
  0x66   : > { %v263_v41 = vadd.f32 %v262_v38, %v261_v34  ;;  %v269_v42 = vrot.slane %v268_v39, 2 }
  0x68   : > { %v264_v44 = vrot.slane %v263_v41, 1  ;;  %v270_v45 = vadd.f32 %v269_v42, %v268_v39 }
  0x6a   : > { %v265_v47 = vadd.f32 %v264_v44, %v263_v41  ;;  %v271_v48 = vrot.slane %v270_v45, 1 }
  0x6c   : > { %v272_v50 = vadd.f32 %v271_v48, %v270_v45  ;;  %561 = vlog2.f32 %v265_v47 }
  0x6e   : > { %563 = vlog2.f32 %v272_v50 }
  0x79   : > { %v562_v60 = vpop.eup %561 }
  0x7a   : > { %v274_v61 = vmul.f32 0.6931472, %v562_v60 }
  0x7b   : > { %v564_v63 = vpop.eup %563 }
  0x7c   : > { %v276_v0 = vmul.f32 0.6931472, %v564_v63  ;;  %v277_v2 = vadd.f32 %v274_v61, %v241_v16 }
  0x7e   : > { %v278_v5 = vadd.f32 %v276_v0, %v248_v18  ;;  %v317_v6 = vsub.f32 %v277_v2, %v299_v62 }
  0x80   : > { %v318_v7 = vsub.f32 %v278_v5, %v306_v3 }
  0x82   : > { %v323_v9 = vcombine.low %v317_v6, %v318_v7 }
  0x84   : > { %v330_v10 = vrot.slane %v323_v9, %v329_v8 }
  0x86   : > { %v337_v12 = vrot.slane %v330_v10, %v329_v8 }
  0x88   : > { %v339_v13 = vadd.f32 %v337_v12, %v316_v11 }
  0x8a   : > { %344 = vst.msk [vmem:[%s857_s26] sm:$0x3] %vm853_vm0, %v339_v13 }
  0x8b   : > { %634 = shalt.err (!%p631_p6)
}
  0x8c   : > { %s635_s6 = scalar_lea.hbm %s358_s3, 32  ;;  %s639_s16 = scalar_lea.hbm %s916_s2, 64 }
  0x8d   : > { %p636_p7 = scmp.ne.s32.totalorder %s358_s3, %s635_s6  ;;  %p640_p4 = scmp.lt.s32.totalorder %s358_s3, %s916_s2 }
  0x8e   : > { %p641_p10 = scmp.lt.s32.totalorder %s639_s16, %s635_s6 }
  0x8f   : > { %p637_p1 = pnand %p636_p7, %p778_p9 }
  0x90   : > { %p642_p8 = por %p641_p10, %p640_p4 }
  0x91   : > { %p638_p2 = pneg %p637_p1 }
  0x93   : > { %p643_p0 = pnand %p642_p8, %p638_p2 }
  0x95   : > { %646 = shalt.err (!%p643_p0)
}
  0x96   : > { %493 = dma.vmem_to_hbm [thread:$0]  (%p778_p9), %s361_s27, 32, %s358_s3, %s346_s7  }
  0x97 PF: > { %s372_s18 = sand.u32 1, %s685_s9   ;;  %p925_p3 = scmp.ge.s32.totalorder %s705_s14, 2 }
  0x98   : > { %s373_s20 = scalar_lea.sflag [#allocation4], %s372_s18 }
  0x99   : > { %p503_p13 = pnand %p925_p3, %p785_p11 }
  0x9b   : > { %p504_p5 = pneg %p503_p13 }
  0x9d   : > { %680 = dma.done.wait (%p504_p5), %s373_s20, 32  }
  0x9e   : > { %682 = vsyncadd (%p504_p5), %s373_s20, 4294967264  ;;  %s21_s14 = sadd.s32 1, %s705_s14   ;;  %s926_s9 = smov %s689_s10 }
  0x9f   : > { %p18_p12 = scmp.ge.s32.totalorder %s21_s14, 4   ;;  %s927_s10 = smov %s693_s11 }
  0xa0   : > { %s928_s11 = smov %s783_s23  ;;  %s929_s12 = smov %s701_s13 }
  0xa1   : > { %s930_s13 = smov %s932_s17  ;;  %20 = sbr.rel (!%p18_p12) target bundleno = 8 (0x8), region = 90 }
  0xa6   :  { %378 = vsyncpa [#allocation3], 1 }
  0xa7   :  { %380 = vsyncpa [#allocation3 + $0x1], 1 }
  0xa8   :  { %381 = vsyncpa [#allocation6], 1 }
  0xa9   :  { %383 = vsyncpa [#allocation6 + $0x1], 1 }
  0xaa   :  { %384 = vsyncpa [#allocation4], 1 }
  0xab   :  { %386 = vsyncpa [#allocation4 + $0x1], 1 }

</bundles_post_ra>
